<compile_context>
chip_gen: v5e
topology: v5e:2x2
jax: 0.10.0
libtpu: 0.0.40
codegen_flags: <defaults>
</compile_context>

<pallas_src>
from functools import partial

import jax
import jax.numpy as jnp
from jax.experimental import pallas as pl
from jax.experimental.pallas import tpu as pltpu


_VMEM_TILE_BUDGET = 16 * 1024 * 1024   # double-buffered (in + out) byte target
_MIN_STEPS_BYTES = 4 * 1024 * 1024     # only force a multi-step grid above this


def _copy_kernel(x_ref, o_ref):
    # Full-tile streaming copy: input block already excludes the chomped tail.
    o_ref[...] = x_ref[...]


def _chomp_slice_kernel(x_ref, o_ref):
    # Short-sequence fallback: static slice of the leading L_out lanes.
    l_out = o_ref.shape[-1]
    o_ref[...] = x_ref[:, :l_out]


def _chomp_tiles(M, L, L_out, dsize):
    """Pick (tile_m, tile_l). tile_l is None for the short-sequence fallback."""
    if L_out >= 128:
        # Lane tile: multiple of 128, capped at 2048 and at L_out.
        tile_l = min(2048, (L_out // 128) * 128)
        per_row_bytes = 2 * 2 * tile_l * dsize          # 2 bufs x (in + out)
    else:
        tile_l = None
        per_row_bytes = 2 * (L + L_out) * dsize         # 2 bufs x (full-L in + out)

    rows = max(8, _VMEM_TILE_BUDGET // per_row_bytes)
    rows = (rows // 8) * 8
    tile_m = M if M <= rows else rows

    # Ensure enough grid steps for the double-buffered pipeline and v7x's two
    # TensorCores, but only when there is enough data to amortize the
    # ~0.35 us per-step overhead.
    if M * L_out * dsize >= _MIN_STEPS_BYTES:
        def steps(tm, tl):
            gl = pl.cdiv(L_out, tl) if tl is not None else 1
            return pl.cdiv(M, tm) * gl

        while steps(tile_m, tile_l) < 8:
            if tile_l is not None and tile_l > 128 and (tile_l >= tile_m or tile_m <= 8):
                tile_l = max(128, ((tile_l // 2) // 128) * 128)
            elif tile_m > 8:
                tile_m = max(8, ((tile_m // 2) // 8) * 8)
            else:
                break

    return tile_m, tile_l


def chomp1d(x, chomp_size):
    """Pallas equivalent of Chomp1d.forward: x[:, :, :-chomp_size]."""
    B, C, L = x.shape
    if chomp_size < 0:
        raise ValueError("chomp_size must be non-negative")

    # Match PyTorch's slice semantics: ':-0' and chomp_size >= L both give an
    # empty last dimension.
    L_out = L - chomp_size if 0 < chomp_size < L else 0
    if L_out == 0:
        return jnp.zeros((B, C, 0), x.dtype)

    M = B * C
    dsize = x.dtype.itemsize
    xf = x.reshape(M, L)

    tile_m, tile_l = _chomp_tiles(M, L, L_out, dsize)

    if tile_l is not None:
        # Lane-tiled path: never reads the chomped columns.
        grid = (pl.cdiv(M, tile_m), pl.cdiv(L_out, tile_l))
        in_specs = [pl.BlockSpec((tile_m, tile_l), lambda i, j: (i, j))]
        out_specs = pl.BlockSpec((tile_m, tile_l), lambda i, j: (i, j))
        kernel = _copy_kernel
        dims = ("parallel", "parallel")
        bytes_read = M * L_out * dsize
    else:
        # Short-sequence fallback: full-L input block, slice inside kernel.
        grid = (pl.cdiv(M, tile_m),)
        in_specs = [pl.BlockSpec((tile_m, L), lambda i: (i, 0))]
        out_specs = pl.BlockSpec((tile_m, L_out), lambda i: (i, 0))
        kernel = _chomp_slice_kernel
        dims = ("parallel",)
        bytes_read = M * L * dsize

    out = pl.pallas_call(
        kernel,
        out_shape=jax.ShapeDtypeStruct((M, L_out), x.dtype),
        grid=grid,
        in_specs=in_specs,
        out_specs=out_specs,
        compiler_params=pltpu.CompilerParams(
            dimension_semantics=dims,
            vmem_limit_bytes=32 * 1024 * 1024,
        ),
        cost_estimate=pl.CostEstimate(
            flops=0,
            transcendentals=0,
            bytes_accessed=bytes_read + M * L_out * dsize,
        ),
    )(xf)
    return out.reshape(B, C, L_out)


if __name__ == "__main__":
    key = jax.random.PRNGKey(0)

    # Small shape consistent with a TCN block: batch=2, channels=4, length=16.
    B, C, L = 2, 4, 16
    chomp_size = 3
    x = jax.random.normal(key, (B, C, L), jnp.float32)

    fn = jax.jit(partial(chomp1d, chomp_size=chomp_size))
    y = jax.block_until_ready(fn(x))
    assert y.shape == (B, C, L - chomp_size)
    assert jnp.array_equal(y, x[:, :, :-chomp_size]), "fallback path mismatch"
    assert bool(jnp.all(jnp.isfinite(y)))

    # Also exercise the lane-tiled (L_out >= 128) fast path at a small size.
    B2, C2, L2, chomp2 = 2, 4, 259, 3   # L_out = 256
    x2 = jax.random.normal(jax.random.PRNGKey(0), (B2, C2, L2), jnp.float32)
    y2 = jax.block_until_ready(jax.jit(partial(chomp1d, chomp_size=chomp2))(x2))
    assert y2.shape == (B2, C2, L2 - chomp2)
    assert jnp.array_equal(y2, x2[:, :, :-chomp2]), "tiled path mismatch"

    print("KERNEL_OK")
</pallas_src>

<mosaic_0001>
module attributes {stable_mosaic.version = 11 : i64} {
  func.func @_chomp_slice_kernel(%arg0: i32, %arg1: memref<8x16xf32, #tpu.memory_space<vmem>>, %arg2: memref<8x13xf32, #tpu.memory_space<vmem>>) attributes {dimension_semantics = [#tpu.dimension_semantics<parallel>], iteration_bounds = array<i64: 1>, scalar_prefetch = 0 : i64, scratch_operands = 0 : i64, tpu.core_type = #tpu.core_type<tc>, window_params = [{transform_indices = @transform_0, window_bounds = array<i64: 8, 16>}, {transform_indices = @transform_1, window_bounds = array<i64: 8, 13>}]} {
    %c0 = arith.constant 0 : index
    %c0_0 = arith.constant 0 : index
    %0 = vector.load %arg1[%c0, %c0_0] : memref<8x16xf32, #tpu.memory_space<vmem>>, vector<8x13xf32>
    %c0_1 = arith.constant 0 : index
    %c0_2 = arith.constant 0 : index
    %1 = vector.load %arg2[%c0_1, %c0_2] : memref<8x13xf32, #tpu.memory_space<vmem>>, vector<8x13xf32>
    tpu.vector_store %arg2[%c0_1, %c0_2], %0 {strides = array<i32>} : memref<8x13xf32, #tpu.memory_space<vmem>>, vector<8x13xf32>,
    return
  }
  func.func @transform_0(%arg0: i32) -> (i32, i32) {
    %c0_i32 = arith.constant 0 : i32
    %c0_i32_0 = arith.constant 0 : i32
    return %arg0, %c0_i32 : i32, i32
  }
  func.func @transform_1(%arg0: i32) -> (i32, i32) {
    %c0_i32 = arith.constant 0 : i32
    %c0_i32_0 = arith.constant 0 : i32
    return %arg0, %c0_i32 : i32, i32
  }
}

</mosaic_0001>

<bundles_post_ra>
// kernel: chomp1d.1
= control target key start
LH: loop header
LB: loop body
LE: loop exit
PB: predicated region body
PF: predicated region fallthrough
CT: control target
= control target key end

     0   :  { %6 = vsyncpa [#allocation3], 0  ;;  %s115_s0 = inlined_call_operand.hbm [shape: f32[8,16], index: 0, kind: input, shape index: {}]   ;;  %s116_s1 = inlined_call_operand.hbm [shape: f32[8,13], index: 1, kind: output, shape index: {}]  }
   0x1   :  { %7 = vsyncpa [#allocation4], 0  ;;  %s13_s8 = sshll.u32 %s115_s0, 4  ;;  %s97_s9 = smov [#allocation2]   ;;  %s14_s8 = int_to_ptr.hbm [resolvable:$true] %s13_s8 }
   0x2   :  { %s15_s10 = sshll.u32 %s97_s9, 4  ;;  %s16_s10 = int_to_ptr.vmem [resolvable:$true] %s15_s10 }
   0x3   :  { %18 = dma.hbm_to_vmem [thread:$0]  %s14_s8, 128, %s16_s10, [#allocation3]  }
   0x4   :  { %93 = dma.done.wait [#allocation3], 128  }
   0x5   :  { %94 = vsyncadd [#allocation3], 4294967168  ;;  %s98_s11 = smov [#allocation5]   ;;  %s33_s15 = sshll.u32 %s116_s1, 4  ;;  %vm24_vm0 = vcmask 105472   ;;  %v23_v0 = vld [vmem:[#allocation2] sm:$0xff]  ;;  %s34_s15 = int_to_ptr.hbm [resolvable:$true] %s33_s15 }
   0x6   :  { %s31_s12 = sshll.u32 %s98_s11, 4  ;;  %25 = vst.msk [vmem:[#allocation5] sm:$0xff] %vm24_vm0, %v23_v0  ;;  %s32_s12 = int_to_ptr.vmem [resolvable:$true] %s31_s12 }
   0x7   :  { %36 = dma.vmem_to_hbm [thread:$0]  %s32_s12, 128, %s34_s15, [#allocation4]  }
   0x8   :  { %95 = dma.done.wait [#allocation4], 128  }
   0x9   :  { %96 = vsyncadd [#allocation4], 4294967168 }
   0xa   :  { %41 = vsyncpa [#allocation3], 1 }
   0xb   :  { %42 = vsyncpa [#allocation4], 1 }

</bundles_post_ra>
